<compile_context>
chip_gen: v7x
topology: tpu7x:2x2x1
jax: 0.10.0
libtpu: 0.0.40
codegen_flags: <defaults>
</compile_context>

<pallas_src>
import functools

import jax
import jax.numpy as jnp
from jax import lax
from jax.experimental import pallas as pl
from jax.experimental.pallas import tpu as pltpu


def _leaky_relu(v, negative_slope=0.01):
    # max(v, a*v) == leaky_relu(v) for a in (0, 1): a single VPU max instead of
    # a compare + select pair. (F.leaky_relu default negative_slope = 0.01.)
    return jnp.maximum(v, negative_slope * v)


def mlp_kernel(x_ref,
               w1_ref, b1_ref,
               w2_ref, b2_ref,
               w3_ref, b3_ref,
               w4_ref, b4_ref,
               w5_ref, b5_ref,
               o_ref):
    # x_ref: (block_b, d_pad) f32 or bf16; w_i: (in, out) bf16; b_i: (1, out) f32.
    h = x_ref[...].astype(jnp.bfloat16)  # no-op if the wrapper already cast
    for w_ref, b_ref in ((w1_ref, b1_ref), (w2_ref, b2_ref),
                         (w3_ref, b3_ref), (w4_ref, b4_ref)):
        acc = jnp.dot(h, w_ref[...], preferred_element_type=jnp.float32)
        h = _leaky_relu(acc + b_ref[...]).astype(jnp.bfloat16)

    # Final 64 -> 1 layer as (1, 64) . (block_b, 64)^T -> (1, block_b): the
    # result row is lane-dense, so the store is a full unmasked vst rather
    # than a 1-lane-wide masked-store column.
    # TODO(synk): per perf review, inspect the bundle dump for a per-step XLU
    # vxpose of h here; if present, compare against the (block_b,64)@(64,1)
    # masked-store variant and keep whichever avoids the transpose.
    y = lax.dot_general(w5_ref[...], h, (((1,), (1,)), ((), ())),
                        preferred_element_type=jnp.float32)
    y = y + b5_ref[...]                        # (1, 1) bias broadcast
    o_ref[...] = y[None].astype(o_ref.dtype)   # (1, 1, block_b)


def _round_up(n, m):
    return ((n + m - 1) // m) * m


def _pick_block_b(batch, requested):
    """Rows of the batch processed per grid step."""
    b8 = _round_up(batch, 8)                     # sublane-aligned
    bb = min(_round_up(requested, 8), b8)
    # v7x megacore: the single "parallel" grid axis is the only thing sharding
    # work across its 2 TensorCores.  When the batch is big enough that
    # halving it still leaves a decent MXU tile, keep at least 2 tiles.
    if b8 >= 1024:
        bb = min(bb, _round_up(pl.cdiv(b8, 2), 8))
    return max(bb, 8)


def _param_spec(a):
    index_map = lambda i: (0,) * a.ndim
    try:
        # Constant index map => the block never changes; single-buffer the
        # VMEM-resident weights/biases instead of the default double-buffering
        # (frees VMEM headroom for larger batch tiles, esp. on v7x).
        return pl.BlockSpec(a.shape, index_map, pipeline_mode=pl.Buffered(1))
    except (TypeError, AttributeError):
        return pl.BlockSpec(a.shape, index_map)


@functools.partial(jax.jit, static_argnames=("block_b",))
def mlp_forward(x, params, block_b=1024):
    """x: (B, input_dim) float32. Returns (B,), matching MLP.forward(x).squeeze()."""
    B, D = x.shape
    (w1, b1), (w2, b2), (w3, b3), (w4, b4), (w5, b5) = params

    bb = _pick_block_b(B, block_b)
    d_pad = _round_up(D, 128)
    b_pad = _round_up(B, bb)
    num_blocks = b_pad // bb

    # Only touch x in HBM when padding is actually required (the bf16 cast
    # happens inside the kernel), so the aligned common case costs zero extra
    # HBM passes.  When a pad is required anyway, fold the bf16 cast into it;
    # explicit zero-pad keeps the padded K lanes zero (w1 pad rows are zero
    # too, so pad lanes contribute nothing).
    if b_pad != B or d_pad != D:
        xb = jnp.pad(x.astype(jnp.bfloat16), ((0, b_pad - B), (0, d_pad - D)))
    else:
        xb = x
    w1p = w1 if d_pad == D else jnp.pad(w1, ((0, d_pad - D), (0, 0)))
    w5_row = jnp.transpose(w5)                      # (1, 64) bf16

    flops = 2 * b_pad * (d_pad * 256 + 256 * 512 + 512 * 256 + 256 * 64 + 64)
    bytes_accessed = (xb.size * xb.dtype.itemsize
                      + (w1p.size + w2.size + w3.size + w4.size + w5.size) * 2
                      + (b1.size + b2.size + b3.size + b4.size + b5.size) * 4
                      + b_pad * 4)

    compiler_kwargs = dict(dimension_semantics=("parallel",))
    if bb >= 2048:
        # Working set at block_b>=2048 (~20 MiB) exceeds v5e's 16 MiB default
        # scoped-VMEM limit; stay well under v7x's 64 MiB physical budget.
        compiler_kwargs["vmem_limit_bytes"] = 40 * 1024 * 1024

    out = pl.pallas_call(
        mlp_kernel,
        out_shape=jax.ShapeDtypeStruct((num_blocks, 1, bb), jnp.float32),
        grid_spec=pltpu.PrefetchScalarGridSpec(
            num_scalar_prefetch=0,
            grid=(num_blocks,),
            in_specs=[
                pl.BlockSpec((bb, d_pad), lambda i: (i, 0)),
                _param_spec(w1p), _param_spec(b1),
                _param_spec(w2), _param_spec(b2),
                _param_spec(w3), _param_spec(b3),
                _param_spec(w4), _param_spec(b4),
                _param_spec(w5_row), _param_spec(b5),
            ],
            out_specs=pl.BlockSpec((1, 1, bb), lambda i: (i, 0, 0)),
        ),
        compiler_params=pltpu.CompilerParams(**compiler_kwargs),
        cost_estimate=pl.CostEstimate(
            flops=flops, transcendentals=0, bytes_accessed=bytes_accessed),
    )(xb, w1p, b1, w2, b2, w3, b3, w4, b4, w5_row, b5)

    # (num_blocks, 1, block_b) -> (b_pad,) row-major matches batch order.
    return out.reshape(b_pad)[:B]


def init_params(key, input_dim):
    """Deterministic init mimicking nn.Linear defaults:
    U(-1/sqrt(fan_in), 1/sqrt(fan_in)) for weight and bias.
    Weights stored as (in, out) = PyTorch weight.T in bfloat16; biases (1, out) f32."""
    dims = [input_dim, 256, 512, 256, 64, 1]
    params = []
    for fan_in, fan_out in zip(dims[:-1], dims[1:]):
        key, kw, kb = jax.random.split(key, 3)
        bound = 1.0 / (fan_in ** 0.5)
        w = jax.random.uniform(kw, (fan_in, fan_out), jnp.float32, -bound, bound)
        b = jax.random.uniform(kb, (1, fan_out), jnp.float32, -bound, bound)
        params.append((w.astype(jnp.bfloat16), b))
    return params


def mlp_reference(x, params):
    """Pure-JAX reference mirroring the kernel's bf16-matmul / f32-accumulate chain."""
    (w1, b1), (w2, b2), (w3, b3), (w4, b4), (w5, b5) = params
    h = x.astype(jnp.bfloat16)
    for w, b in ((w1, b1), (w2, b2), (w3, b3), (w4, b4)):
        acc = jnp.dot(h, w, preferred_element_type=jnp.float32) + b
        h = _leaky_relu(acc).astype(jnp.bfloat16)
    y = jnp.dot(h, w5, preferred_element_type=jnp.float32) + b5
    return jnp.squeeze(y, axis=-1)


if __name__ == "__main__":
    key = jax.random.PRNGKey(0)
    kx, kx2, kp, kp2 = jax.random.split(key, 4)

    # Case 1: unaligned shapes (exercises the pad+cast wrapper path).
    batch, input_dim = 8, 32
    x = jax.random.normal(kx, (batch, input_dim), jnp.float32)
    params = init_params(kp, input_dim)
    out = jax.block_until_ready(mlp_forward(x, params))
    ref = mlp_reference(x, params)
    assert out.shape == (batch,), out.shape
    # Both sides run the same bf16-input / f32-accumulate chain; tolerance
    # covers accumulation-order differences in the final 64-element reduction.
    assert jnp.allclose(out, ref, atol=1e-2, rtol=1e-2), (out, ref)

    # Case 2: aligned shapes (exercises the zero-extra-HBM-pass f32 input path).
    batch2, input_dim2 = 16, 128
    x2 = jax.random.normal(kx2, (batch2, input_dim2), jnp.float32)
    params2 = init_params(kp2, input_dim2)
    out2 = jax.block_until_ready(mlp_forward(x2, params2))
    ref2 = mlp_reference(x2, params2)
    assert out2.shape == (batch2,), out2.shape
    assert jnp.allclose(out2, ref2, atol=1e-2, rtol=1e-2), (out2, ref2)

    print("KERNEL_OK")
</pallas_src>

<mosaic_0001>
module attributes {stable_mosaic.version = 11 : i64} {
  func.func @mlp_kernel(%arg0: i32, %arg1: memref<8x128xbf16, #tpu.memory_space<vmem>>, %arg2: memref<128x256xbf16, #tpu.memory_space<vmem>>, %arg3: memref<1x256xf32, #tpu.memory_space<vmem>>, %arg4: memref<256x512xbf16, #tpu.memory_space<vmem>>, %arg5: memref<1x512xf32, #tpu.memory_space<vmem>>, %arg6: memref<512x256xbf16, #tpu.memory_space<vmem>>, %arg7: memref<1x256xf32, #tpu.memory_space<vmem>>, %arg8: memref<256x64xbf16, #tpu.memory_space<vmem>>, %arg9: memref<1x64xf32, #tpu.memory_space<vmem>>, %arg10: memref<1x64xbf16, #tpu.memory_space<vmem>>, %arg11: memref<1x1xf32, #tpu.memory_space<vmem>>, %arg12: memref<1x1x8xf32, #tpu.memory_space<vmem>>) attributes {dimension_semantics = [#tpu.dimension_semantics<parallel>], iteration_bounds = array<i64: 1>, scalar_prefetch = 0 : i64, scratch_operands = 0 : i64, tpu.core_type = #tpu.core_type<tc>, window_params = [{transform_indices = @transform_0, window_bounds = array<i64: 8, 128>}, {pipeline_mode = #tpu.pipeline_mode<synchronous>, transform_indices = @transform_1, window_bounds = array<i64: 128, 256>}, {pipeline_mode = #tpu.pipeline_mode<synchronous>, transform_indices = @transform_2, window_bounds = array<i64: 1, 256>}, {pipeline_mode = #tpu.pipeline_mode<synchronous>, transform_indices = @transform_3, window_bounds = array<i64: 256, 512>}, {pipeline_mode = #tpu.pipeline_mode<synchronous>, transform_indices = @transform_4, window_bounds = array<i64: 1, 512>}, {pipeline_mode = #tpu.pipeline_mode<synchronous>, transform_indices = @transform_5, window_bounds = array<i64: 512, 256>}, {pipeline_mode = #tpu.pipeline_mode<synchronous>, transform_indices = @transform_6, window_bounds = array<i64: 1, 256>}, {pipeline_mode = #tpu.pipeline_mode<synchronous>, transform_indices = @transform_7, window_bounds = array<i64: 256, 64>}, {pipeline_mode = #tpu.pipeline_mode<synchronous>, transform_indices = @transform_8, window_bounds = array<i64: 1, 64>}, {pipeline_mode = #tpu.pipeline_mode<synchronous>, transform_indices = @transform_9, window_bounds = array<i64: 1, 64>}, {pipeline_mode = #tpu.pipeline_mode<synchronous>, transform_indices = @transform_10, window_bounds = array<i64: 1, 1>}, {transform_indices = @transform_11, window_bounds = array<i64: 1, 1, 8>}]} {
    %c0 = arith.constant 0 : index
    %c0_0 = arith.constant 0 : index
    %0 = vector.load %arg1[%c0, %c0_0] : memref<8x128xbf16, #tpu.memory_space<vmem>>, vector<8x128xbf16>
    %c0_1 = arith.constant 0 : index
    %c0_2 = arith.constant 0 : index
    %1 = vector.load %arg2[%c0_1, %c0_2] : memref<128x256xbf16, #tpu.memory_space<vmem>>, vector<128x256xbf16>
    %cst = arith.constant dense<0.000000e+00> : vector<8x256xf32>
    %2 = tpu.matmul %0, %1, %cst {dimension_numbers = #tpu.dot_dimension_numbers<[1], [0], [0], [1], [0, 0, 1, 1], [], []>} : vector<8x128xbf16>, vector<128x256xbf16>, vector<8x256xf32> -> vector<8x256xf32>
    %c0_3 = arith.constant 0 : index
    %c0_4 = arith.constant 0 : index
    %3 = vector.load %arg3[%c0_3, %c0_4] : memref<1x256xf32, #tpu.memory_space<vmem>>, vector<1x256xf32>
    %4 = vector.broadcast %3 : vector<1x256xf32> to vector<8x256xf32>
    %5 = arith.addf %2, %4 : vector<8x256xf32>
    %cst_5 = arith.constant 0.00999999977 : f32
    %6 = vector.broadcast %cst_5 : f32 to vector<8x256xf32>
    %7 = arith.mulf %6, %5 : vector<8x256xf32>
    %8 = arith.maximumf %5, %7 : vector<8x256xf32>
    %9 = arith.truncf %8 : vector<8x256xf32> to vector<8x256xbf16>
    %c0_6 = arith.constant 0 : index
    %c0_7 = arith.constant 0 : index
    %10 = vector.load %arg4[%c0_6, %c0_7] : memref<256x512xbf16, #tpu.memory_space<vmem>>, vector<256x512xbf16>
    %cst_8 = arith.constant dense<0.000000e+00> : vector<8x512xf32>
    %11 = tpu.matmul %9, %10, %cst_8 {dimension_numbers = #tpu.dot_dimension_numbers<[1], [0], [0], [1], [0, 0, 1, 1], [], []>} : vector<8x256xbf16>, vector<256x512xbf16>, vector<8x512xf32> -> vector<8x512xf32>
    %c0_9 = arith.constant 0 : index
    %c0_10 = arith.constant 0 : index
    %12 = vector.load %arg5[%c0_9, %c0_10] : memref<1x512xf32, #tpu.memory_space<vmem>>, vector<1x512xf32>
    %13 = vector.broadcast %12 : vector<1x512xf32> to vector<8x512xf32>
    %14 = arith.addf %11, %13 : vector<8x512xf32>
    %cst_11 = arith.constant 0.00999999977 : f32
    %15 = vector.broadcast %cst_11 : f32 to vector<8x512xf32>
    %16 = arith.mulf %15, %14 : vector<8x512xf32>
    %17 = arith.maximumf %14, %16 : vector<8x512xf32>
    %18 = arith.truncf %17 : vector<8x512xf32> to vector<8x512xbf16>
    %c0_12 = arith.constant 0 : index
    %c0_13 = arith.constant 0 : index
    %19 = vector.load %arg6[%c0_12, %c0_13] : memref<512x256xbf16, #tpu.memory_space<vmem>>, vector<512x256xbf16>
    %cst_14 = arith.constant dense<0.000000e+00> : vector<8x256xf32>
    %20 = tpu.matmul %18, %19, %cst_14 {dimension_numbers = #tpu.dot_dimension_numbers<[1], [0], [0], [1], [0, 0, 1, 1], [], []>} : vector<8x512xbf16>, vector<512x256xbf16>, vector<8x256xf32> -> vector<8x256xf32>
    %c0_15 = arith.constant 0 : index
    %c0_16 = arith.constant 0 : index
    %21 = vector.load %arg7[%c0_15, %c0_16] : memref<1x256xf32, #tpu.memory_space<vmem>>, vector<1x256xf32>
    %22 = vector.broadcast %21 : vector<1x256xf32> to vector<8x256xf32>
    %23 = arith.addf %20, %22 : vector<8x256xf32>
    %cst_17 = arith.constant 0.00999999977 : f32
    %24 = vector.broadcast %cst_17 : f32 to vector<8x256xf32>
    %25 = arith.mulf %24, %23 : vector<8x256xf32>
    %26 = arith.maximumf %23, %25 : vector<8x256xf32>
    %27 = arith.truncf %26 : vector<8x256xf32> to vector<8x256xbf16>
    %c0_18 = arith.constant 0 : index
    %c0_19 = arith.constant 0 : index
    %28 = vector.load %arg8[%c0_18, %c0_19] : memref<256x64xbf16, #tpu.memory_space<vmem>>, vector<256x64xbf16>
    %cst_20 = arith.constant dense<0.000000e+00> : vector<8x64xf32>
    %29 = tpu.matmul %27, %28, %cst_20 {dimension_numbers = #tpu.dot_dimension_numbers<[1], [0], [0], [1], [0, 0, 1, 1], [], []>} : vector<8x256xbf16>, vector<256x64xbf16>, vector<8x64xf32> -> vector<8x64xf32>
    %c0_21 = arith.constant 0 : index
    %c0_22 = arith.constant 0 : index
    %30 = vector.load %arg9[%c0_21, %c0_22] : memref<1x64xf32, #tpu.memory_space<vmem>>, vector<1x64xf32>
    %31 = vector.broadcast %30 : vector<1x64xf32> to vector<8x64xf32>
    %32 = arith.addf %29, %31 : vector<8x64xf32>
    %cst_23 = arith.constant 0.00999999977 : f32
    %33 = vector.broadcast %cst_23 : f32 to vector<8x64xf32>
    %34 = arith.mulf %33, %32 : vector<8x64xf32>
    %35 = arith.maximumf %32, %34 : vector<8x64xf32>
    %36 = arith.truncf %35 : vector<8x64xf32> to vector<8x64xbf16>
    %c0_24 = arith.constant 0 : index
    %c0_25 = arith.constant 0 : index
    %37 = vector.load %arg10[%c0_24, %c0_25] : memref<1x64xbf16, #tpu.memory_space<vmem>>, vector<1x64xbf16>
    %cst_26 = arith.constant dense<0.000000e+00> : vector<1x8xf32>
    %38 = tpu.matmul %37, %36, %cst_26 {dimension_numbers = #tpu.dot_dimension_numbers<[1], [1], [0], [0], [0, 0, 1, 0], [], []>} : vector<1x64xbf16>, vector<8x64xbf16>, vector<1x8xf32> -> vector<1x8xf32>
    %c0_27 = arith.constant 0 : index
    %c0_28 = arith.constant 0 : index
    %39 = vector.load %arg11[%c0_27, %c0_28] : memref<1x1xf32, #tpu.memory_space<vmem>>, vector<1x1xf32>
    %40 = vector.broadcast %39 : vector<1x1xf32> to vector<1x8xf32>
    %41 = arith.addf %38, %40 : vector<1x8xf32>
    %42 = vector.shape_cast %41 : vector<1x8xf32> to vector<1x1x8xf32>
    %c0_29 = arith.constant 0 : index
    %c0_30 = arith.constant 0 : index
    %c0_31 = arith.constant 0 : index
    %43 = vector.load %arg12[%c0_29, %c0_30, %c0_31] : memref<1x1x8xf32, #tpu.memory_space<vmem>>, vector<1x1x8xf32>
    tpu.vector_store %arg12[%c0_29, %c0_30, %c0_31], %42 {strides = array<i32>} : memref<1x1x8xf32, #tpu.memory_space<vmem>>, vector<1x1x8xf32>,
    return
  }
  func.func @transform_0(%arg0: i32) -> (i32, i32) {
    %c0_i32 = arith.constant 0 : i32
    %c0_i32_0 = arith.constant 0 : i32
    return %arg0, %c0_i32 : i32, i32
  }
  func.func @transform_1(%arg0: i32) -> (i32, i32) {
    %c0_i32 = arith.constant 0 : i32
    %c0_i32_0 = arith.constant 0 : i32
    %c0_i32_1 = arith.constant 0 : i32
    return %c0_i32, %c0_i32_0 : i32, i32
  }
  func.func @transform_2(%arg0: i32) -> (i32, i32) {
    %c0_i32 = arith.constant 0 : i32
    %c0_i32_0 = arith.constant 0 : i32
    %c0_i32_1 = arith.constant 0 : i32
    return %c0_i32, %c0_i32_0 : i32, i32
  }
  func.func @transform_3(%arg0: i32) -> (i32, i32) {
    %c0_i32 = arith.constant 0 : i32
    %c0_i32_0 = arith.constant 0 : i32
    %c0_i32_1 = arith.constant 0 : i32
    return %c0_i32, %c0_i32_0 : i32, i32
  }
  func.func @transform_4(%arg0: i32) -> (i32, i32) {
    %c0_i32 = arith.constant 0 : i32
    %c0_i32_0 = arith.constant 0 : i32
    %c0_i32_1 = arith.constant 0 : i32
    return %c0_i32, %c0_i32_0 : i32, i32
  }
  func.func @transform_5(%arg0: i32) -> (i32, i32) {
    %c0_i32 = arith.constant 0 : i32
    %c0_i32_0 = arith.constant 0 : i32
    %c0_i32_1 = arith.constant 0 : i32
    return %c0_i32, %c0_i32_0 : i32, i32
  }
  func.func @transform_6(%arg0: i32) -> (i32, i32) {
    %c0_i32 = arith.constant 0 : i32
    %c0_i32_0 = arith.constant 0 : i32
    %c0_i32_1 = arith.constant 0 : i32
    return %c0_i32, %c0_i32_0 : i32, i32
  }
  func.func @transform_7(%arg0: i32) -> (i32, i32) {
    %c0_i32 = arith.constant 0 : i32
    %c0_i32_0 = arith.constant 0 : i32
    %c0_i32_1 = arith.constant 0 : i32
    return %c0_i32, %c0_i32_0 : i32, i32
  }
  func.func @transform_8(%arg0: i32) -> (i32, i32) {
    %c0_i32 = arith.constant 0 : i32
    %c0_i32_0 = arith.constant 0 : i32
    %c0_i32_1 = arith.constant 0 : i32
    return %c0_i32, %c0_i32_0 : i32, i32
  }
  func.func @transform_9(%arg0: i32) -> (i32, i32) {
    %c0_i32 = arith.constant 0 : i32
    %c0_i32_0 = arith.constant 0 : i32
    %c0_i32_1 = arith.constant 0 : i32
    return %c0_i32, %c0_i32_0 : i32, i32
  }
  func.func @transform_10(%arg0: i32) -> (i32, i32) {
    %c0_i32 = arith.constant 0 : i32
    %c0_i32_0 = arith.constant 0 : i32
    %c0_i32_1 = arith.constant 0 : i32
    return %c0_i32, %c0_i32_0 : i32, i32
  }
  func.func @transform_11(%arg0: i32) -> (i32, i32, i32) {
    %c0_i32 = arith.constant 0 : i32
    %c0_i32_0 = arith.constant 0 : i32
    %c0_i32_1 = arith.constant 0 : i32
    return %arg0, %c0_i32, %c0_i32_0 : i32, i32, i32
  }
}

</mosaic_0001>

<bundles_post_ra>
// kernel: mlp_forward.1
= control target key start
LH: loop header
LB: loop body
LE: loop exit
PB: predicated region body
PF: predicated region fallthrough
CT: control target
= control target key end

     0   :  { %s2226_s0 = inlined_call_operand.vmem [shape: bf16[8,128], index: 0, kind: input, shape index: {}]   ;;  %s2227_s1 = inlined_call_operand.vmem [shape: bf16[128,256], index: 1, kind: input, shape index: {}]   ;;  %s2228_s2 = inlined_call_operand.vmem [shape: f32[1,256], index: 2, kind: input, shape index: {}]   ;;  %s2229_s3 = inlined_call_operand.hbm [shape: bf16[256,512], index: 3, kind: input, shape index: {}]   ;;  %s2230_s4 = inlined_call_operand.vmem [shape: f32[1,512], index: 4, kind: input, shape index: {}]   ;;  %s2231_s5 = inlined_call_operand.hbm [shape: bf16[512,256], index: 5, kind: input, shape index: {}]   ;;  %s2232_s6 = inlined_call_operand.vmem [shape: f32[1,256], index: 6, kind: input, shape index: {}]   ;;  %s2233_s7 = inlined_call_operand.vmem [shape: bf16[256,64], index: 7, kind: input, shape index: {}]   ;;  %s2234_s8 = inlined_call_operand.vmem [shape: f32[1,64], index: 8, kind: input, shape index: {}]   ;;  %s2235_s9 = inlined_call_operand.vmem [shape: bf16[1,64], index: 9, kind: input, shape index: {}]   ;;  %s2236_s10 = inlined_call_operand.<no memory space> [shape: f32[1,1], index: 10, kind: input, shape index: {}]   ;;  %s2237_s11 = inlined_call_operand.hbm [shape: f32[1,1,8], index: 11, kind: output, shape index: {}]  }
   0x1   :  { %v16_v0 = vstv %s2236_s10 }
   0x2   :  { %17 = vst [vmem:[#allocation2] sm:$0x1] %v16_v0 }
   0x3   :  { %18 = vsyncpa [#allocation4], 0 }
   0x4   :  { %19 = vsyncpa [#allocation7], 0 }
   0x5   :  { %20 = vsyncpa [#allocation5], 0  ;;  %s1977_s19 = smov [#allocation3]   ;;  %s1905_s23 = scalar_lea.hbm %s2229_s3, 8192 }
   0x6   :  { %s32_s20 = sshll.u32 %s1977_s19, 4  ;;  %p1906_p0 = scmp.ne.s32.totalorder %s2229_s3, %s1905_s23  ;;  %s33_s20 = int_to_ptr.vmem [resolvable:$true] %s32_s20 }
   0x7   :  { %p1909_p1 = scmp.lt.u32.totalorder %s1905_s23, %s2229_s3 }
   0x9   :  { %p1911_p2 = pnand %p1909_p1, %p1906_p0 }
   0xb   :  { %1914 = shalt.err (!%p1911_p2)
}
   0xc   :  { %s1915_s10 = scalar_lea.vmem %s33_s20, 8192  ;;  %p1920_p4 = scmp.lt.s32.totalorder %s33_s20, %s33_s20 }
   0xd   :  { %p1916_p3 = scmp.ne.s32.totalorder %s33_s20, %s1915_s10  ;;  %p1921_p5 = scmp.lt.s32.totalorder %s1915_s10, %s1915_s10 }
   0xf   :  { %p1922_p6 = por %p1921_p5, %p1920_p4 }
  0x11   :  { %p1923_p7 = pnand %p1922_p6, %p1916_p3 }
  0x13   :  { %1926 = shalt.err (!%p1923_p7)
}
  0x14   :  { %s1978_s28 = smov 256   ;;  %s1979_s29 = smov 16  }
  0x15   :  { %38 = dma.hbm_to_vmem [thread:$0]  %s2229_s3, 8192, %s33_s20, [#allocation4], %s1978_s28, %s1978_s28, %s1979_s29  }
  0x16   :  { %s1980_s13 = smov [#allocation6]   ;;  %s1927_s17 = scalar_lea.hbm %s2231_s5, 8192 }
  0x17   :  { %s46_s14 = sshll.u32 %s1980_s13, 4  ;;  %p1928_p8 = scmp.ne.s32.totalorder %s2231_s5, %s1927_s17  ;;  %s47_s14 = int_to_ptr.vmem [resolvable:$true] %s46_s14 }
  0x18   :  { %p1931_p9 = scmp.lt.u32.totalorder %s1927_s17, %s2231_s5 }
  0x1a   :  { %p1933_p10 = pnand %p1931_p9, %p1928_p8 }
  0x1c   :  { %1936 = shalt.err (!%p1933_p10)
}
  0x1d   :  { %s1937_s23 = scalar_lea.vmem %s47_s14, 8192  ;;  %p1942_p12 = scmp.lt.s32.totalorder %s47_s14, %s47_s14 }
  0x1e   :  { %p1938_p11 = scmp.ne.s32.totalorder %s47_s14, %s1937_s23  ;;  %p1943_p13 = scmp.lt.s32.totalorder %s1937_s23, %s1937_s23 }
  0x20   :  { %p1944_p0 = por %p1943_p13, %p1942_p12 }
  0x22   :  { %p1945_p1 = pnand %p1944_p0, %p1938_p11 }
  0x24   :  { %1948 = shalt.err (!%p1945_p1)
}
  0x25   :  { %s1981_s3 = smov 128   ;;  %s1982_s20 = smov 8  }
  0x26   :  { %52 = dma.hbm_to_vmem [thread:$0]  %s2231_s5, 8192, %s47_s14, [#allocation7], %s1981_s3, %s1981_s3, %s1982_s20  }
  0x27   :  { %1971 = dma.done.wait [#allocation4], 8192  }
  0x28   :  { %1972 = vsyncadd [#allocation4], 4294959104 }
  0x29   :  { %1973 = dma.done.wait [#allocation7], 8192  }
  0x2a   :  { %1974 = vsyncadd [#allocation7], 4294959104  ;;  %v1983_v1 = vmov 0   ;;  %v1673_v2 = vld [vmem:[%s2227_s1 + $0x4] ss:$8 sps:$4 sm:$0xff]   ;;  %vm1985_vm0 = vmmov 0  }
  0x2b   :  { %211 = vmatprep.mubr.bf16.mxu0 %v1983_v1  ;;  %1672 = vset.pattern.permute.xlu0 %v1983_v1  ;;  %v1675_v3 = vld [vmem:[%s2227_s1] ss:$8 sps:$4 sm:$0xff]   ;;  %v1676_v4 = vld [vmem:[%s2227_s1 + $0x14] ss:$8 sps:$4 sm:$0xff]   ;;  %v1678_v5 = vld [vmem:[%s2227_s1 + $0x10] ss:$8 sps:$4 sm:$0xff]  }
  0x2c   :  { %179 = vmatprep.subr.bf16.mxu0 %v1673_v2  ;;  %v1679_v6 = vld [vmem:[%s2227_s1 + $0x24] ss:$8 sps:$4 sm:$0xff]   ;;  %v1681_v7 = vld [vmem:[%s2227_s1 + $0x20] ss:$8 sps:$4 sm:$0xff]   ;;  %v1682_v8 = vld [vmem:[%s2227_s1 + $0x34] ss:$8 sps:$4 sm:$0xff]  }
  0x2d   :  { %180 = vmatpush1.bf16.msra.mxu0 %v1675_v3  ;;  %v1684_v9 = vld [vmem:[%s2227_s1 + $0x30] ss:$8 sps:$4 sm:$0xff]   ;;  %v1685_v11 = vld [vmem:[%s2227_s1 + $0x44] ss:$8 sps:$4 sm:$0xff]   ;;  %v1687_v14 = vld [vmem:[%s2227_s1 + $0x40] ss:$8 sps:$4 sm:$0xff]  }
  0x2e   :  { %181 = vmatprep.subr.bf16.mxu0 %v1676_v4  ;;  %v1697_v10 = vld [vmem:[#allocation3 + $0x4] ss:$16 sps:$4 sm:$0xff]   ;;  %v1702_v12 = vld [vmem:[#allocation3] ss:$16 sps:$4 sm:$0xff]   ;;  %v1701_v27 = vld [vmem:[#allocation3 + $0xc] ss:$16 sps:$4 sm:$0xff]  }
  0x2f   :  { %632 = vmatprep.subr.bf16.mxu1 %v1697_v10  ;;  %v1703_v13 = vld [vmem:[#allocation3 + $0x24] ss:$16 sps:$4 sm:$0xff]   ;;  %v1708_v16 = vld [vmem:[#allocation3 + $0x20] ss:$16 sps:$4 sm:$0xff]   ;;  %v1699_v31 = vld [vmem:[#allocation3 + $0x8] ss:$16 sps:$4 sm:$0xff]  }
  0x30   :  { %v1688_v15 = vld [vmem:[%s2227_s1 + $0x54] ss:$8 sps:$4 sm:$0xff]   ;;  %633 = vmatpush1.bf16.msra.mxu1 %v1702_v12  ;;  %v1690_v18 = vld [vmem:[%s2227_s1 + $0x50] ss:$8 sps:$4 sm:$0xff]   ;;  %v1691_v19 = vld [vmem:[%s2227_s1 + $0x64] ss:$8 sps:$4 sm:$0xff]  }
  0x31   :  { %182 = vmatpush1.bf16.msra.mxu0 %v1678_v5  ;;  %634 = vmatprep.subr.bf16.mxu1 %v1703_v13  ;;  %v1709_v17 = vld [vmem:[#allocation3 + $0x44] ss:$16 sps:$4 sm:$0xff]   ;;  %v1714_v20 = vld [vmem:[#allocation3 + $0x40] ss:$16 sps:$4 sm:$0xff]   ;;  %v1707_v32 = vld [vmem:[#allocation3 + $0x2c] ss:$16 sps:$4 sm:$0xff]  }
  0x32   :  { %183 = vmatprep.subr.bf16.mxu0 %v1679_v6  ;;  %v1715_v21 = vld [vmem:[#allocation3 + $0x64] ss:$16 sps:$4 sm:$0xff]   ;;  %v1720_v24 = vld [vmem:[#allocation3 + $0x60] ss:$16 sps:$4 sm:$0xff]   ;;  %v1705_v35 = vld [vmem:[#allocation3 + $0x28] ss:$16 sps:$4 sm:$0xff]  }
  0x33   :  { %v1693_v22 = vld [vmem:[%s2227_s1 + $0x60] ss:$8 sps:$4 sm:$0xff]   ;;  %v1694_v23 = vld [vmem:[%s2227_s1 + $0x74] ss:$8 sps:$4 sm:$0xff]   ;;  %v1696_v26 = vld [vmem:[%s2227_s1 + $0x70] ss:$8 sps:$4 sm:$0xff]  }
  0x34   :  { %635 = vmatpush1.bf16.msra.mxu1 %v1708_v16  ;;  %v1721_v25 = vld [vmem:[#allocation3 + $0x84] ss:$16 sps:$4 sm:$0xff]   ;;  %v1726_v28 = vld [vmem:[#allocation3 + $0x80] ss:$16 sps:$4 sm:$0xff]   ;;  %v1713_v36 = vld [vmem:[#allocation3 + $0x4c] ss:$16 sps:$4 sm:$0xff]  }
  0x35   :  { %184 = vmatpush1.bf16.msra.mxu0 %v1681_v7  ;;  %636 = vmatprep.subr.bf16.mxu1 %v1709_v17  ;;  %v1727_v29 = vld [vmem:[#allocation3 + $0xa4] ss:$16 sps:$4 sm:$0xff]   ;;  %v70_v30 = vld [vmem:[%s2226_s0] sm:$0xf]  ;;  %v1711_v39 = vld [vmem:[#allocation3 + $0x48] ss:$16 sps:$4 sm:$0xff]  }
  0x36   :  { %185 = vmatprep.subr.bf16.mxu0 %v1682_v8  ;;  %v1732_v33 = vld [vmem:[#allocation3 + $0xa0] ss:$16 sps:$4 sm:$0xff]   ;;  %v1733_v34 = vld [vmem:[#allocation3 + $0xc4] ss:$16 sps:$4 sm:$0xff]   ;;  %v1719_v40 = vld [vmem:[#allocation3 + $0x6c] ss:$16 sps:$4 sm:$0xff]  }
  0x37   :  { %v1738_v37 = vld [vmem:[#allocation3 + $0xc0] ss:$16 sps:$4 sm:$0xff]   ;;  %v1739_v38 = vld [vmem:[#allocation3 + $0xe4] ss:$16 sps:$4 sm:$0xff]   ;;  %v1717_v43 = vld [vmem:[#allocation3 + $0x68] ss:$16 sps:$4 sm:$0xff]  }
  0x38   :  { %637 = vmatpush1.bf16.msra.mxu1 %v1714_v20  ;;  %v1744_v41 = vld [vmem:[#allocation3 + $0xe0] ss:$16 sps:$4 sm:$0xff]   ;;  %v1745_v42 = vld [vmem:[#allocation3 + $0x104] ss:$16 sps:$4 sm:$0xff]   ;;  %v1725_v44 = vld [vmem:[#allocation3 + $0x8c] ss:$16 sps:$4 sm:$0xff]   ;;  %v89_v20 = vlaneseq }
  0x39   :  { %186 = vmatpush1.bf16.msra.mxu0 %v1684_v9  ;;  %638 = vmatprep.subr.bf16.mxu1 %v1715_v21  ;;  %v1750_v45 = vld [vmem:[#allocation3 + $0x100] ss:$16 sps:$4 sm:$0xff]   ;;  %v1751_v46 = vld [vmem:[#allocation3 + $0x124] ss:$16 sps:$4 sm:$0xff]   ;;  %v1723_v47 = vld [vmem:[#allocation3 + $0x88] ss:$16 sps:$4 sm:$0xff]  }
  0x3a   :  { %187 = vmatprep.subr.bf16.mxu0 %v1685_v11  ;;  %v1731_v48 = vld [vmem:[#allocation3 + $0xac] ss:$16 sps:$4 sm:$0xff]   ;;  %v1756_v49 = vld [vmem:[#allocation3 + $0x120] ss:$16 sps:$4 sm:$0xff]   ;;  %v1757_v50 = vld [vmem:[#allocation3 + $0x144] ss:$16 sps:$4 sm:$0xff]  }
  0x3b   :  { %v1729_v51 = vld [vmem:[#allocation3 + $0xa8] ss:$16 sps:$4 sm:$0xff]   ;;  %v1762_v52 = vld [vmem:[#allocation3 + $0x140] ss:$16 sps:$4 sm:$0xff]   ;;  %v1737_v53 = vld [vmem:[#allocation3 + $0xcc] ss:$16 sps:$4 sm:$0xff]  }
  0x3c   :  { %639 = vmatpush1.bf16.msra.mxu1 %v1720_v24  ;;  %v1763_v54 = vld [vmem:[#allocation3 + $0x164] ss:$16 sps:$4 sm:$0xff]   ;;  %v1735_v55 = vld [vmem:[#allocation3 + $0xc8] ss:$16 sps:$4 sm:$0xff]   ;;  %v1768_v56 = vld [vmem:[#allocation3 + $0x160] ss:$16 sps:$4 sm:$0xff]  }
  0x3d   :  { %188 = vmatpush1.bf16.msra.mxu0 %v1687_v14  ;;  %640 = vmatprep.subr.bf16.mxu1 %v1721_v25  ;;  %v1743_v57 = vld [vmem:[#allocation3 + $0xec] ss:$16 sps:$4 sm:$0xff]   ;;  %v1769_v58 = vld [vmem:[#allocation3 + $0x184] ss:$16 sps:$4 sm:$0xff]   ;;  %v1741_v59 = vld [vmem:[#allocation3 + $0xe8] ss:$16 sps:$4 sm:$0xff]  }
  0x3e   :  { %189 = vmatprep.subr.bf16.mxu0 %v1688_v15  ;;  %v1774_v60 = vld [vmem:[#allocation3 + $0x180] ss:$16 sps:$4 sm:$0xff]   ;;  %v1749_v61 = vld [vmem:[#allocation3 + $0x10c] ss:$16 sps:$4 sm:$0xff]   ;;  %v1775_v62 = vld [vmem:[#allocation3 + $0x1a4] ss:$16 sps:$4 sm:$0xff]  }
  0x3f   :  { %v1747_v63 = vld [vmem:[#allocation3 + $0x108] ss:$16 sps:$4 sm:$0xff]   ;;  %v1755_v0 = vld [vmem:[#allocation3 + $0x12c] ss:$16 sps:$4 sm:$0xff]   ;;  %v1780_v10 = vld [vmem:[#allocation3 + $0x1a0] ss:$16 sps:$4 sm:$0xff]  }
  0x40   :  { %641 = vmatpush1.bf16.msra.mxu1 %v1726_v28  ;;  %v1753_v1 = vld [vmem:[#allocation3 + $0x128] ss:$16 sps:$4 sm:$0xff]   ;;  %v1761_v2 = vld [vmem:[#allocation3 + $0x14c] ss:$16 sps:$4 sm:$0xff]   ;;  %v1781_v11 = vld [vmem:[#allocation3 + $0x1c4] ss:$16 sps:$4 sm:$0xff]  }
  0x41   :  { %190 = vmatpush1.bf16.msra.mxu0 %v1690_v18  ;;  %642 = vmatprep.subr.bf16.mxu1 %v1727_v29  ;;  %v1759_v3 = vld [vmem:[#allocation3 + $0x148] ss:$16 sps:$4 sm:$0xff]   ;;  %v1767_v4 = vld [vmem:[#allocation3 + $0x16c] ss:$16 sps:$4 sm:$0xff]   ;;  %v1786_v14 = vld [vmem:[#allocation3 + $0x1c0] ss:$16 sps:$4 sm:$0xff]  }
  0x42   :  { %191 = vmatprep.subr.bf16.mxu0 %v1691_v19  ;;  %v1765_v5 = vld [vmem:[#allocation3 + $0x168] ss:$16 sps:$4 sm:$0xff]   ;;  %v1773_v6 = vld [vmem:[#allocation3 + $0x18c] ss:$16 sps:$4 sm:$0xff]   ;;  %v1787_v15 = vld [vmem:[#allocation3 + $0x1e4] ss:$16 sps:$4 sm:$0xff]  }
  0x43   :  { %v1771_v7 = vld [vmem:[#allocation3 + $0x188] ss:$16 sps:$4 sm:$0xff]   ;;  %v1779_v8 = vld [vmem:[#allocation3 + $0x1ac] ss:$16 sps:$4 sm:$0xff]   ;;  %v1792_v18 = vld [vmem:[#allocation3 + $0x1e0] ss:$16 sps:$4 sm:$0xff]  }
  0x44   :  { %643 = vmatpush1.bf16.msra.mxu1 %v1732_v33  ;;  %v1777_v9 = vld [vmem:[#allocation3 + $0x1a8] ss:$16 sps:$4 sm:$0xff]   ;;  %v1785_v12 = vld [vmem:[#allocation3 + $0x1cc] ss:$16 sps:$4 sm:$0xff]   ;;  %v2125_v21 = vshrl.u32 %v89_v20, 7  ;;  %vm1399_vm1 = vcmask 523264  }
  0x45   :  { %192 = vmatpush1.bf16.msra.mxu0 %v1693_v22  ;;  %644 = vmatprep.subr.bf16.mxu1 %v1733_v34  ;;  %v1783_v13 = vld [vmem:[#allocation3 + $0x1c8] ss:$16 sps:$4 sm:$0xff]   ;;  %v1791_v16 = vld [vmem:[#allocation3 + $0x1ec] ss:$16 sps:$4 sm:$0xff]   ;;  %vm1446_vm2 = vcmask 57344  }
  0x46   :  { %193 = vmatprep.subr.bf16.mxu0 %v1694_v23  ;;  %v1789_v17 = vld [vmem:[#allocation3 + $0x1e8] ss:$16 sps:$4 sm:$0xff]   ;;  %v1795_v19 = vld [vmem:[#allocation6 + $0x4] ss:$8 sps:$4 sm:$0xff]   ;;  %v2128_v22 = vsub.s32 0, %v2125_v21  ;;  %v2134_v24 = vsub.s32 1, %v2125_v21 }
  0x47   :  { %v87_v23 = vld [vmem:[%s2228_s2] sm:$0x3] }
  0x48   :  { %645 = vmatpush1.bf16.msra.mxu1 %v1738_v37  ;;  %v92_v25 = vrot.slane %v87_v23, %v2128_v22 }
  0x49   :  { %194 = vmatpush1.bf16.msra.mxu0 %v1696_v26  ;;  %646 = vmatprep.subr.bf16.mxu1 %v1739_v38  ;;  %v96_v26 = vrot.slane %v87_v23, %v2134_v24  ;;  %v1793_v38 = vld [vmem:[#allocation6] ss:$8 sps:$4 sm:$0xff]  }
  0x4a   :  { %673 = vmatprep.subr.bf16.mxu0 %v1701_v27 }
  0x4c   :  { %212 = vmatmul.mubr.bf16.vlgmr.msra.gmra.mrb[0].mxu0 %v70_v30  ;;  %647 = vmatpush1.bf16.msra.mxu1 %v1744_v41  ;;  %v1796_v41 = vld [vmem:[#allocation6 + $0x10] ss:$8 sps:$4 sm:$0xff]  }
  0x4d   :  { %674 = vmatpush1.bf16.msra.mxu0 %v1699_v31  ;;  %648 = vmatprep.subr.bf16.mxu1 %v1745_v42  ;;  %v1801_v42 = vld [vmem:[#allocation6 + $0x24] ss:$8 sps:$4 sm:$0xff]  }
  0x4e   :  { %675 = vmatprep.subr.bf16.mxu0 %v1707_v32 }
  0x50   :  { %649 = vmatpush1.bf16.msra.mxu1 %v1750_v45  ;;  %v1802_v45 = vld [vmem:[#allocation6 + $0x30] ss:$8 sps:$4 sm:$0xff]  }
  0x51   :  { %676 = vmatpush1.bf16.msra.mxu0 %v1705_v35  ;;  %650 = vmatprep.subr.bf16.mxu1 %v1751_v46  ;;  %v1807_v46 = vld [vmem:[#allocation6 + $0x44] ss:$8 sps:$4 sm:$0xff]  }
  0x52   :  { %677 = vmatprep.subr.bf16.mxu0 %v1713_v36 }
  0x54   :  { %651 = vmatpush1.bf16.msra.mxu1 %v1756_v49  ;;  %v1808_v49 = vld [vmem:[#allocation6 + $0x50] ss:$8 sps:$4 sm:$0xff]  }
  0x55   :  { %678 = vmatpush1.bf16.msra.mxu0 %v1711_v39  ;;  %652 = vmatprep.subr.bf16.mxu1 %v1757_v50  ;;  %v1813_v50 = vld [vmem:[#allocation6 + $0x64] ss:$8 sps:$4 sm:$0xff]  }
  0x56   :  { %679 = vmatprep.subr.bf16.mxu0 %v1719_v40  ;;  %v1798_v40 = vld [vmem:[#allocation6 + $0x14] ss:$8 sps:$4 sm:$0xff]  }
  0x58   :  { %653 = vmatpush1.bf16.msra.mxu1 %v1762_v52  ;;  %v1816_v52 = vld [vmem:[#allocation6 + $0x74] ss:$8 sps:$4 sm:$0xff]  }
  0x59   :  { %680 = vmatpush1.bf16.msra.mxu0 %v1717_v43  ;;  %654 = vmatprep.subr.bf16.mxu1 %v1763_v54  ;;  %v1799_v43 = vld [vmem:[#allocation6 + $0x20] ss:$8 sps:$4 sm:$0xff]   ;;  %v1819_v54 = vld [vmem:[#allocation6 + $0x84] ss:$8 sps:$4 sm:$0xff]  }
  0x5a   :  { %681 = vmatprep.subr.bf16.mxu0 %v1725_v44  ;;  %v1804_v44 = vld [vmem:[#allocation6 + $0x34] ss:$8 sps:$4 sm:$0xff]  }
  0x5c   :  { %655 = vmatpush1.bf16.msra.mxu1 %v1768_v56  ;;  %v1822_v56 = vld [vmem:[#allocation6 + $0x94] ss:$8 sps:$4 sm:$0xff]  }
  0x5d   :  { %682 = vmatpush1.bf16.msra.mxu0 %v1723_v47  ;;  %656 = vmatprep.subr.bf16.mxu1 %v1769_v58  ;;  %v1805_v47 = vld [vmem:[#allocation6 + $0x40] ss:$8 sps:$4 sm:$0xff]   ;;  %v1825_v58 = vld [vmem:[#allocation6 + $0xa4] ss:$8 sps:$4 sm:$0xff]  }
  0x5e   :  { %683 = vmatprep.subr.bf16.mxu0 %v1731_v48  ;;  %v1810_v48 = vld [vmem:[#allocation6 + $0x54] ss:$8 sps:$4 sm:$0xff]  }
  0x60   :  { %657 = vmatpush1.bf16.msra.mxu1 %v1774_v60  ;;  %v1828_v60 = vld [vmem:[#allocation6 + $0xb4] ss:$8 sps:$4 sm:$0xff]  }
  0x61   :  { %684 = vmatpush1.bf16.msra.mxu0 %v1729_v51  ;;  %658 = vmatprep.subr.bf16.mxu1 %v1775_v62  ;;  %v1811_v51 = vld [vmem:[#allocation6 + $0x60] ss:$8 sps:$4 sm:$0xff]   ;;  %v1831_v62 = vld [vmem:[#allocation6 + $0xc4] ss:$8 sps:$4 sm:$0xff]  }
  0x62   :  { %685 = vmatprep.subr.bf16.mxu0 %v1737_v53  ;;  %v1814_v53 = vld [vmem:[#allocation6 + $0x70] ss:$8 sps:$4 sm:$0xff]  }
  0x64   :  { %659 = vmatpush1.bf16.msra.mxu1 %v1780_v10  ;;  %v1892_v10 = vld [vmem:[%s2233_s7 + $0x8] sm:$0xff]  }
  0x65   :  { %686 = vmatpush1.bf16.msra.mxu0 %v1735_v55  ;;  %660 = vmatprep.subr.bf16.mxu1 %v1781_v11  ;;  %v1817_v55 = vld [vmem:[#allocation6 + $0x80] ss:$8 sps:$4 sm:$0xff]   ;;  %v1893_v11 = vld [vmem:[%s2233_s7 + $0x50] sm:$0xff]  }
  0x66   :  { %687 = vmatprep.subr.bf16.mxu0 %v1743_v57  ;;  %v1820_v57 = vld [vmem:[#allocation6 + $0x90] ss:$8 sps:$4 sm:$0xff]  }
  0x68   :  { %661 = vmatpush1.bf16.msra.mxu1 %v1786_v14  ;;  %v1896_v14 = vld [vmem:[%s2233_s7 + $0x18] sm:$0xff]  }
  0x69   :  { %688 = vmatpush1.bf16.msra.mxu0 %v1741_v59  ;;  %662 = vmatprep.subr.bf16.mxu1 %v1787_v15  ;;  %v1823_v59 = vld [vmem:[#allocation6 + $0xa0] ss:$8 sps:$4 sm:$0xff]  }
  0x6a   :  { %689 = vmatprep.subr.bf16.mxu0 %v1749_v61  ;;  %v1826_v61 = vld [vmem:[#allocation6 + $0xb0] ss:$8 sps:$4 sm:$0xff]   ;;  %v1897_v15 = vld [vmem:[%s2233_s7 + $0x60] sm:$0xff]  }
  0x6c   :  { %663 = vmatpush1.bf16.msra.mxu1 %v1792_v18  ;;  %v2174_v18 = vld [vmem:[%s2230_s4] sm:$0xf] }
  0x6d   :  { %690 = vmatpush1.bf16.msra.mxu0 %v1747_v63  ;;  %1122 = vmatprep.subr.bf16.mxu1 %v1795_v19  ;;  %v1829_v63 = vld [vmem:[#allocation6 + $0xc0] ss:$8 sps:$4 sm:$0xff]   ;;  %v306_v19 = vsub.s32 3, %v2125_v21  ;;  %v295_v20 = vrot.slane %v2174_v18, %v2128_v22  ;;  %v299_v23 = vrot.slane %v2174_v18, %v2134_v24 }
  0x6e   :  { %691 = vmatprep.subr.bf16.mxu0 %v1755_v0  ;;  %v1834_v0 = vld [vmem:[#allocation6 + $0xd4] ss:$8 sps:$4 sm:$0xff]  }
  0x71   :  { %692 = vmatpush1.bf16.msra.mxu0 %v1753_v1  ;;  %v1832_v1 = vld [vmem:[#allocation6 + $0xd0] ss:$8 sps:$4 sm:$0xff]  }
  0x72   :  { %693 = vmatprep.subr.bf16.mxu0 %v1761_v2  ;;  %v1837_v2 = vld [vmem:[#allocation6 + $0xe4] ss:$8 sps:$4 sm:$0xff]  }
  0x75   :  { %694 = vmatpush1.bf16.msra.mxu0 %v1759_v3  ;;  %v1835_v3 = vld [vmem:[#allocation6 + $0xe0] ss:$8 sps:$4 sm:$0xff]  }
  0x76   :  { %695 = vmatprep.subr.bf16.mxu0 %v1767_v4  ;;  %v1840_v4 = vld [vmem:[#allocation6 + $0xf4] ss:$8 sps:$4 sm:$0xff]  }
  0x79   :  { %696 = vmatpush1.bf16.msra.mxu0 %v1765_v5  ;;  %v1838_v5 = vld [vmem:[#allocation6 + $0xf0] ss:$8 sps:$4 sm:$0xff]  }
  0x7a   :  { %697 = vmatprep.subr.bf16.mxu0 %v1773_v6  ;;  %v1843_v6 = vld [vmem:[#allocation6 + $0x104] ss:$8 sps:$4 sm:$0xff]  }
  0x7d   :  { %698 = vmatpush1.bf16.msra.mxu0 %v1771_v7  ;;  %v1889_v7 = vld [vmem:[%s2233_s7 + $0x40] sm:$0xff]  }
  0x7e   :  { %699 = vmatprep.subr.bf16.mxu0 %v1779_v8  ;;  %v1890_v8 = vld [vmem:[%s2233_s7] sm:$0xff]  }
  0x81   :  { %700 = vmatpush1.bf16.msra.mxu0 %v1777_v9  ;;  %v1891_v9 = vld [vmem:[%s2233_s7 + $0x48] sm:$0xff]  }
  0x82   :  { %701 = vmatprep.subr.bf16.mxu0 %v1785_v12  ;;  %v1894_v12 = vld [vmem:[%s2233_s7 + $0x10] sm:$0xff]  }
  0x85   :  { %702 = vmatpush1.bf16.msra.mxu0 %v1783_v13  ;;  %v1895_v13 = vld [vmem:[%s2233_s7 + $0x58] sm:$0xff]  }
  0x86   :  { %703 = vmatprep.subr.bf16.mxu0 %v1791_v16  ;;  %v1898_v16 = vld [vmem:[%s2233_s7 + $0x20] sm:$0xff]  }
  0x89   :  { %704 = vmatpush1.bf16.msra.mxu0 %v1789_v17  ;;  %v1899_v17 = vld [vmem:[%s2233_s7 + $0x68] sm:$0xff]  }
  0x8a   :  { %1626 = vmatprep.subr.bf16.mxu0 %v1889_v7  ;;  %v1877_v7 = vld [vmem:[#allocation6 + $0x1c0] ss:$8 sps:$4 sm:$0xff]  }
 0x11f   :  { %v213_v27 = vpop.f32.mrb[0].mxu0 }
 0x120   :  { %v214_v28 = vadd.f32 %v213_v27, %v92_v25  ;;  %v215_v29 = vpop.f32.mrb[1].mxu0  ;;  %v307_v25 = vrot.slane %v2174_v18, %v306_v19  ;;  %v1901_v19 = vld [vmem:[%s2233_s7 + $0x70] sm:$0xff]  }
 0x121   :  { %v216_v30 = vadd.f32 %v215_v29, %v96_v26  ;;  %v217_v31 = vpop.f32.mrb[2].mxu0 }
 0x122   :  { %v220_v32 = vmul.f32 0.01, %v214_v28  ;;  %v218_v33 = vpop.f32.mrb[3].mxu0 }
 0x123   :  { %v221_v34 = vmul.f32 0.01, %v216_v30 }
 0x124   :  { %v222_v35 = vmax.f32 %v214_v28, %v220_v32 }
 0x125   :  { %v223_v36 = vmax.f32 %v216_v30, %v221_v34 }
 0x126   :  { %v224_v39 = vpack.c.bf16 %v222_v35, %v222_v35 }
 0x127   :  { %v225_v37 = vpack.c.bf16 %v223_v36, %v223_v36 }
 0x129   :  { %664 = vmatprep.mubr.bf16.mxu1 %v225_v37  ;;  %705 = vmatprep.mubr.bf16.mxu0 %v225_v37 }
 0x12a   :  { %665 = vmatmul.mubr.bf16.vlgmr.msra.gmra.mrb[0].mxu1 %v224_v39  ;;  %706 = vmatmul.mubr.bf16.vlgmr.msra.gmra.mrb[4].mxu0 %v224_v39 }
 0x12b   :  { %1123 = vmatpush1.bf16.msra.mxu1 %v1793_v38  ;;  %1627 = vmatpush3.bf16.msra.mxu0 %v1890_v8 }
 0x12c   :  { %1124 = vmatprep.subr.bf16.mxu1 %v1798_v40  ;;  %1628 = vmatprep.subr.bf16.mxu0 %v1891_v9  ;;  %v1882_v9 = vld [vmem:[#allocation6 + $0x1d4] ss:$8 sps:$4 sm:$0xff]  }
 0x12f   :  { %1125 = vmatpush1.bf16.msra.mxu1 %v1796_v41  ;;  %1629 = vmatpush3.bf16.msra.mxu0 %v1892_v10  ;;  %v1880_v10 = vld [vmem:[#allocation6 + $0x1d0] ss:$8 sps:$4 sm:$0xff]  }
 0x130   :  { %1126 = vmatprep.subr.bf16.mxu1 %v1801_v42  ;;  %1630 = vmatprep.subr.bf16.mxu0 %v1893_v11 }
 0x133   :  { %1127 = vmatpush1.bf16.msra.mxu1 %v1799_v43  ;;  %1631 = vmatpush3.bf16.msra.mxu0 %v1894_v12  ;;  %v1885_v12 = vld [vmem:[#allocation6 + $0x1e4] ss:$8 sps:$4 sm:$0xff]  }
 0x134   :  { %1128 = vmatprep.subr.bf16.mxu1 %v1804_v44  ;;  %1632 = vmatprep.subr.bf16.mxu0 %v1895_v13  ;;  %v1841_v44 = vld [vmem:[#allocation6 + $0x100] ss:$8 sps:$4 sm:$0xff]  }
 0x135   :  { %v1883_v13 = vld [vmem:[#allocation6 + $0x1e0] ss:$8 sps:$4 sm:$0xff]  }
 0x137   :  { %1129 = vmatpush1.bf16.msra.mxu1 %v1802_v45  ;;  %1633 = vmatpush3.bf16.msra.mxu0 %v1896_v14 }
 0x138   :  { %1130 = vmatprep.subr.bf16.mxu1 %v1807_v46  ;;  %1634 = vmatprep.subr.bf16.mxu0 %v1897_v15  ;;  %v1846_v46 = vld [vmem:[#allocation6 + $0x114] ss:$8 sps:$4 sm:$0xff]  }
 0x139   :  { %v1888_v15 = vld [vmem:[#allocation6 + $0x1f4] ss:$8 sps:$4 sm:$0xff]  }
 0x13b   :  { %1131 = vmatpush1.bf16.msra.mxu1 %v1805_v47  ;;  %1635 = vmatpush3.bf16.msra.mxu0 %v1898_v16 }
 0x13c   :  { %1132 = vmatprep.subr.bf16.mxu1 %v1810_v48  ;;  %1636 = vmatprep.subr.bf16.mxu0 %v1899_v17  ;;  %v1844_v48 = vld [vmem:[#allocation6 + $0x110] ss:$8 sps:$4 sm:$0xff]  }
 0x13f   :  { %1133 = vmatpush1.bf16.msra.mxu1 %v1808_v49  ;;  %v1849_v49 = vld [vmem:[#allocation6 + $0x124] ss:$8 sps:$4 sm:$0xff]  }
 0x140   :  { %1134 = vmatprep.subr.bf16.mxu1 %v1813_v50  ;;  %v1847_v50 = vld [vmem:[#allocation6 + $0x120] ss:$8 sps:$4 sm:$0xff]  }
 0x143   :  { %1135 = vmatpush1.bf16.msra.mxu1 %v1811_v51  ;;  %v1852_v51 = vld [vmem:[#allocation6 + $0x134] ss:$8 sps:$4 sm:$0xff]  }
 0x144   :  { %1136 = vmatprep.subr.bf16.mxu1 %v1816_v52  ;;  %v1850_v52 = vld [vmem:[#allocation6 + $0x130] ss:$8 sps:$4 sm:$0xff]  }
 0x147   :  { %1137 = vmatpush1.bf16.msra.mxu1 %v1814_v53  ;;  %v1855_v53 = vld [vmem:[#allocation6 + $0x144] ss:$8 sps:$4 sm:$0xff]  }
 0x148   :  { %1138 = vmatprep.subr.bf16.mxu1 %v1819_v54  ;;  %v1853_v54 = vld [vmem:[#allocation6 + $0x140] ss:$8 sps:$4 sm:$0xff]  }
 0x14b   :  { %1139 = vmatpush1.bf16.msra.mxu1 %v1817_v55  ;;  %v1858_v55 = vld [vmem:[#allocation6 + $0x154] ss:$8 sps:$4 sm:$0xff]  }
 0x14c   :  { %1140 = vmatprep.subr.bf16.mxu1 %v1822_v56  ;;  %v1856_v56 = vld [vmem:[#allocation6 + $0x150] ss:$8 sps:$4 sm:$0xff]  }
 0x14f   :  { %1141 = vmatpush1.bf16.msra.mxu1 %v1820_v57  ;;  %v1861_v57 = vld [vmem:[#allocation6 + $0x164] ss:$8 sps:$4 sm:$0xff]  }
 0x150   :  { %1142 = vmatprep.subr.bf16.mxu1 %v1825_v58  ;;  %v1859_v58 = vld [vmem:[#allocation6 + $0x160] ss:$8 sps:$4 sm:$0xff]  }
 0x153   :  { %1143 = vmatpush1.bf16.msra.mxu1 %v1823_v59  ;;  %v1864_v59 = vld [vmem:[#allocation6 + $0x174] ss:$8 sps:$4 sm:$0xff]  }
 0x154   :  { %1144 = vmatprep.subr.bf16.mxu1 %v1828_v60  ;;  %v1862_v60 = vld [vmem:[#allocation6 + $0x170] ss:$8 sps:$4 sm:$0xff]  }
 0x157   :  { %1145 = vmatpush1.bf16.msra.mxu1 %v1826_v61  ;;  %v1867_v61 = vld [vmem:[#allocation6 + $0x184] ss:$8 sps:$4 sm:$0xff]  }
 0x158   :  { %1146 = vmatprep.subr.bf16.mxu1 %v1831_v62  ;;  %v1865_v62 = vld [vmem:[#allocation6 + $0x180] ss:$8 sps:$4 sm:$0xff]  }
 0x15b   :  { %1147 = vmatpush1.bf16.msra.mxu1 %v1829_v63  ;;  %v1870_v63 = vld [vmem:[#allocation6 + $0x194] ss:$8 sps:$4 sm:$0xff]  }
 0x15c   :  { %1148 = vmatprep.subr.bf16.mxu1 %v1834_v0  ;;  %v1868_v0 = vld [vmem:[#allocation6 + $0x190] ss:$8 sps:$4 sm:$0xff]  }
 0x15f   :  { %1149 = vmatpush1.bf16.msra.mxu1 %v1832_v1  ;;  %v1873_v1 = vld [vmem:[#allocation6 + $0x1a4] ss:$8 sps:$4 sm:$0xff]  }
 0x160   :  { %1150 = vmatprep.subr.bf16.mxu1 %v1837_v2  ;;  %v1871_v2 = vld [vmem:[#allocation6 + $0x1a0] ss:$8 sps:$4 sm:$0xff]  }
 0x163   :  { %1151 = vmatpush1.bf16.msra.mxu1 %v1835_v3  ;;  %v1876_v3 = vld [vmem:[#allocation6 + $0x1b4] ss:$8 sps:$4 sm:$0xff]  }
 0x164   :  { %1152 = vmatprep.subr.bf16.mxu1 %v1840_v4  ;;  %v1874_v4 = vld [vmem:[#allocation6 + $0x1b0] ss:$8 sps:$4 sm:$0xff]  }
 0x167   :  { %1153 = vmatpush1.bf16.msra.mxu1 %v1838_v5  ;;  %v302_v5 = vsub.s32 2, %v2125_v21  ;;  %v1886_v21 = vld [vmem:[#allocation6 + $0x1f0] ss:$8 sps:$4 sm:$0xff]  }
 0x168   :  { %1163 = vmatprep.subr.bf16.mxu1 %v1843_v6  ;;  %v1879_v6 = vld [vmem:[#allocation6 + $0x1c4] ss:$8 sps:$4 sm:$0xff]  }
 0x169   :  { %v303_v8 = vrot.slane %v2174_v18, %v302_v5  ;;  %v1900_v18 = vld [vmem:[%s2233_s7 + $0x28] sm:$0xff]  }
 0x16a   :  { %1637 = vmatpush3.bf16.msra.mxu0 %v1900_v18 }
 0x16b   :  { %1638 = vmatprep.subr.bf16.mxu0 %v1901_v19 }
 0x1fd   :  { %v666_v26 = vpop.f32.mrb[0].mxu1  ;;  %v2182_v27 = vpop.f32.mrb[4].mxu0 }
 0x1fe   :  { %v667_v28 = vadd.f32 %v666_v26, %v295_v20  ;;  %v668_v29 = vpop.f32.mrb[1].mxu1  ;;  %v709_v30 = vpop.f32.mrb[5].mxu0  ;;  %v708_v11 = vadd.f32 %v2182_v27, %v303_v8  ;;  %v1902_v20 = vld [vmem:[%s2233_s7 + $0x30] sm:$0xff]   ;;  %v790_v26 = vld [vmem:[%s2232_s6] sm:$0x3] }
 0x1ff   :  { %v669_v31 = vadd.f32 %v668_v29, %v299_v23  ;;  %v710_v32 = vadd.f32 %v709_v30, %v307_v25  ;;  %v670_v33 = vpop.f32.mrb[2].mxu1  ;;  %v711_v34 = vpop.f32.mrb[6].mxu0  ;;  %1639 = vmatpush3.bf16.msra.mxu0 %v1902_v20  ;;  %v1903_v23 = vld [vmem:[%s2233_s7 + $0x78] sm:$0xff]   ;;  %v795_v27 = vrot.slane %v790_v26, %v2128_v22 }
 0x200   :  { %v714_v35 = vmul.f32 0.01, %v667_v28  ;;  %v671_v36 = vpop.f32.mrb[3].mxu1  ;;  %v712_v37 = vpop.f32.mrb[7].mxu0  ;;  %v716_v14 = vmul.f32 0.01, %v708_v11  ;;  %1640 = vmatprep.subr.bf16.mxu0 %v1903_v23 }
 0x201   :  { %v715_v38 = vmul.f32 0.01, %v669_v31  ;;  %v717_v39 = vmul.f32 0.01, %v710_v32  ;;  %v1904_v25 = vld [vmem:[%s2233_s7 + $0x38] sm:$0xff]  }
 0x202   :  { %v718_v40 = vmax.f32 %v667_v28, %v714_v35  ;;  %v720_v16 = vmax.f32 %v708_v11, %v716_v14  ;;  %v799_v28 = vrot.slane %v790_v26, %v2134_v24 }
 0x203   :  { %v719_v41 = vmax.f32 %v669_v31, %v715_v38  ;;  %v721_v42 = vmax.f32 %v710_v32, %v717_v39  ;;  %1641 = vmatpush3.bf16.msra.mxu0 %v1904_v25 }
 0x204   :  { %v722_v45 = vpack.c.bf16 %v718_v40, %v718_v40  ;;  %v724_v17 = vpack.c.bf16 %v720_v16, %v720_v16 }
 0x205   :  { %v723_v43 = vpack.c.bf16 %v719_v41, %v719_v41  ;;  %v725_v47 = vpack.c.bf16 %v721_v42, %v721_v42  ;;  %v1984_v41 = vmov 0.0   ;;  %v1389_v42 = vld [vmem:[#allocation2] sm:$0x1] }
 0x206   :  { %1650 = vmatprep.subr.bf16.mxu0 %v1984_v41  ;;  %1392 = vperm.xlu0 %1672, %v1389_v42  }
 0x207   :  { %1154 = vmatprep.mubr.bf16.mxu1 %v723_v43  ;;  %v1608_v43 = vld [vmem:[%s2234_s8] ss:$0 sm:$0xff]  ;;  %s1986_s8 = smov [#allocation8]  }
 0x208   :  { %1155 = vmatmul.mubr.bf16.vlgmr.msra.gmra.mrb[4].mxu1 %v722_v45  ;;  %s1454_s27 = sshll.u32 %s1986_s8, 4  ;;  %s1455_s27 = int_to_ptr.vmem [resolvable:$true] %s1454_s27 }
 0x209   :  { %1164 = vmatpush1.bf16.msra.mxu1 %v1841_v44  ;;  %1195 = vmatprep.mubr.bf16.mxu1 %v725_v47  ;;  %s1949_s10 = scalar_lea.vmem %s1455_s27, 16  ;;  %s1953_s28 = scalar_lea.vmem %s1455_s27, 32 }
 0x20a   :  { %1165 = vmatprep.subr.bf16.mxu1 %v1846_v46  ;;  %p1950_p2 = scmp.ne.s32.totalorder %s1455_s27, %s1949_s10  ;;  %p1954_p3 = scmp.lt.s32.totalorder %s1455_s27, %s1455_s27 }
 0x20b   :  { %p1955_p4 = scmp.lt.s32.totalorder %s1953_s28, %s1949_s10 }
 0x20d   :  { %1166 = vmatpush1.bf16.msra.mxu1 %v1844_v48  ;;  %p1956_p5 = por %p1955_p4, %p1954_p3 }
 0x20e   :  { %1167 = vmatprep.subr.bf16.mxu1 %v1849_v49 }
 0x20f   :  { %p1957_p6 = pnand %p1956_p5, %p1950_p2 }
 0x211   :  { %1168 = vmatpush1.bf16.msra.mxu1 %v1847_v50 }
 0x212   :  { %1169 = vmatprep.subr.bf16.mxu1 %v1852_v51 }
 0x215   :  { %1170 = vmatpush1.bf16.msra.mxu1 %v1850_v52 }
 0x216   :  { %1171 = vmatprep.subr.bf16.mxu1 %v1855_v53  ;;  %v1388_v53 = vld [vmem:[%s2235_s9] sm:$0x1] }
 0x219   :  { %1172 = vmatpush1.bf16.msra.mxu1 %v1853_v54 }
 0x21a   :  { %1173 = vmatprep.subr.bf16.mxu1 %v1858_v55 }
 0x21d   :  { %1174 = vmatpush1.bf16.msra.mxu1 %v1856_v56 }
 0x21e   :  { %1175 = vmatprep.subr.bf16.mxu1 %v1861_v57 }
 0x221   :  { %1176 = vmatpush1.bf16.msra.mxu1 %v1859_v58 }
 0x222   :  { %1177 = vmatprep.subr.bf16.mxu1 %v1864_v59 }
 0x225   :  { %1178 = vmatpush1.bf16.msra.mxu1 %v1862_v60 }
 0x226   :  { %1179 = vmatprep.subr.bf16.mxu1 %v1867_v61 }
 0x229   :  { %1180 = vmatpush1.bf16.msra.mxu1 %v1865_v62 }
 0x22a   :  { %1181 = vmatprep.subr.bf16.mxu1 %v1870_v63 }
 0x22d   :  { %1182 = vmatpush1.bf16.msra.mxu1 %v1868_v0 }
 0x22e   :  { %1183 = vmatprep.subr.bf16.mxu1 %v1873_v1 }
 0x231   :  { %1184 = vmatpush1.bf16.msra.mxu1 %v1871_v2 }
 0x232   :  { %1185 = vmatprep.subr.bf16.mxu1 %v1876_v3 }
 0x235   :  { %1186 = vmatpush1.bf16.msra.mxu1 %v1874_v4 }
 0x236   :  { %1187 = vmatprep.subr.bf16.mxu1 %v1879_v6 }
 0x239   :  { %1188 = vmatpush1.bf16.msra.mxu1 %v1877_v7 }
 0x23a   :  { %1189 = vmatprep.subr.bf16.mxu1 %v1882_v9 }
 0x23d   :  { %1190 = vmatpush1.bf16.msra.mxu1 %v1880_v10 }
 0x23e   :  { %1191 = vmatprep.subr.bf16.mxu1 %v1885_v12 }
 0x241   :  { %1192 = vmatpush1.bf16.msra.mxu1 %v1883_v13 }
 0x242   :  { %1193 = vmatprep.subr.bf16.mxu1 %v1888_v15 }
 0x245   :  { %1194 = vmatpush1.bf16.msra.mxu1 %v1886_v21 }
 0x248   :  { %1196 = vmatmul.mubr.bf16.vlgmr.msra.gmra.mrb[4].mxu1 %v724_v17 }
 0x285   :  { %v1393_v54 = vpop.permute.xlu0 %1392 }
 0x286   :  { %v1398_v55 = vrot.slane %v1393_v54, %v2128_v22 }
 0x31b   :  { %v1197_v29 = vpop.f32.mrb[4].mxu1 }
 0x31c   :  { %v1656_v30 = vadd.f32 %v1197_v29, %v795_v27  ;;  %v1199_v31 = vpop.f32.mrb[5].mxu1 }
 0x31d   :  { %v1657_v32 = vadd.f32 %v1199_v31, %v799_v28  ;;  %v1201_v33 = vpop.f32.mrb[6].mxu1 }
 0x31e   :  { %v1204_v34 = vmul.f32 0.01, %v1656_v30  ;;  %v1202_v35 = vpop.f32.mrb[7].mxu1 }
 0x31f   :  { %v1205_v36 = vmul.f32 0.01, %v1657_v32 }
 0x320   :  { %v1206_v37 = vmax.f32 %v1656_v30, %v1204_v34 }
 0x321   :  { %v1207_v38 = vmax.f32 %v1657_v32, %v1205_v36 }
 0x322   :  { %v1208_v40 = vpack.c.bf16 %v1206_v37, %v1206_v37 }
 0x323   :  { %v1209_v39 = vpack.c.bf16 %v1207_v38, %v1207_v38 }
 0x325   :  { %1377 = vmatprep.mubr.bf16.mxu0 %v1209_v39 }
 0x326   :  { %1378 = vmatmul.mubr.bf16.vlgmr.msra.gmra.mrb[8].mxu0 %v1208_v40 }
 0x327   :  { %1652 = vmatprep.mubr.msk.bf16.mxu0 %vm1985_vm0, %v1984_v41 }
 0x3f9   :  { %v1642_v24 = vpop.f32.mrb[8].mxu0 }
 0x3fa   :  { %v1643_v44 = vpop.f32.mrb[9].mxu0 }
 0x3fb   :  { %v1644_v45 = vadd.f32 %v1643_v44, %v1642_v24  ;;  %v1645_v46 = vpop.f32.mrb[10].mxu0 }
 0x3fc   :  { %v1646_v47 = vpop.f32.mrb[11].mxu0 }
 0x3fd   :  { %v1380_v48 = vadd.f32 %v1644_v45, %v1608_v43 }
 0x3ff   :  { %v1385_v49 = vmul.f32 0.01, %v1380_v48 }
 0x401   :  { %v1386_v50 = vmax.f32 %v1380_v48, %v1385_v49 }
 0x403   :  { %v1387_v51 = vpack.c.bf16 %v1386_v50, %v1386_v50 }
 0x405   :  { %v1404_v52 = vsel %vm1399_vm1, %v1387_v51, 0 }
 0x406   :  { %1651 = vmatpush3.bf16.xpose.msra.mxu0 %v1404_v52 }
 0x40d   :  { %1653 = vmatmul.mubr.msk.bf16.vlgmr.msra.gmra.mrb[12].mxu0 %vm1399_vm1, %v1388_v53 }
 0x4e0   :  { %v1440_v56 = vpop.f32.mrb[12].mxu0 }
 0x4e1   :  { %v1441_v57 = vadd.f32 %v1440_v56, %v1398_v55  ;;  %v1654_v58 = vpop.f32.mrb[13].mxu0 }
 0x4e2   :  { %v1443_v59 = vpop.f32.mrb[14].mxu0 }
 0x4e3   :  { %v1655_v60 = vpop.f32.mrb[15].mxu0  ;;  %1447 = vst.msk [vmem:[#allocation8] sm:$0x1] %vm1446_vm2, %v1441_v57 }
 0x4e4   :  { %1960 = shalt.err (!%p1957_p6)
}
 0x4e5   :  { %s1961_s30 = scalar_lea.hbm %s2237_s11, 16 }
 0x4e6   :  { %p1962_p7 = scmp.ne.s32.totalorder %s2237_s11, %s1961_s30  ;;  %p1965_p8 = scmp.lt.u32.totalorder %s1961_s30, %s2237_s11 }
 0x4e8   :  { %p1967_p9 = pnand %p1965_p8, %p1962_p7 }
 0x4ea   :  { %1970 = shalt.err (!%p1967_p9)
}
 0x4eb   :  { %1457 = dma.vmem_to_hbm [thread:$0]  %s1455_s27, 16, %s2237_s11, [#allocation5]  }
 0x4ec   :  { %1975 = dma.done.wait [#allocation5], 16  }
 0x4ed   :  { %1976 = vsyncadd [#allocation5], 4294967280 }
 0x4ee   :  { %1461 = vsyncpa [#allocation4], 1 }
 0x4ef   :  { %1462 = vsyncpa [#allocation7], 1 }
 0x4f0   :  { %1463 = vsyncpa [#allocation5], 1 }

</bundles_post_ra>
